<compile_context>
chip_gen: v6e
topology: v6e:2x2x1
jax: 0.10.0
libtpu: 0.0.40
codegen_flags: <defaults>
</compile_context>

<pallas_src>
from functools import partial

import numpy as np
import jax
import jax.numpy as jnp
from jax.experimental import pallas as pl
from jax.experimental.pallas import tpu as pltpu

VMEM_SPEC = pl.BlockSpec(memory_space=pltpu.MemorySpace.VMEM)
T_TILE = 128        # destination (target-node) rows handled per grid step
E_TILE_ALIGN = 128  # lane alignment of the per-tile edge budget


def round_up(x, m):
    return ((x + m - 1) // m) * m


# ----------------------------- Pallas kernels -----------------------------

def _linear_kernel(x_ref, wt_ref, b_ref, o_ref):
    # y = x @ W^T + b  (wt pre-transposed to (in, out), bf16; bias f32)
    o_ref[...] = (jnp.dot(x_ref[...], wt_ref[...],
                          preferred_element_type=jnp.float32) + b_ref[...])


def linear(x, w_t, b):
    """x: (M, in), w_t: (in, out) bf16, b: (1, out) f32 -> (M, out) f32."""
    M = x.shape[0]
    out = w_t.shape[1]
    return pl.pallas_call(
        _linear_kernel,
        out_shape=jax.ShapeDtypeStruct((M, out), jnp.float32),
        in_specs=[VMEM_SPEC, VMEM_SPEC, VMEM_SPEC],
        out_specs=VMEM_SPEC,
    )(x.astype(jnp.bfloat16), w_t, b)


def _metapath_tile_kernel(x_ref, wih_ref, whh_ref, bih_ref, bhh_ref,
                          wattn_ref, dst_ref, o_ref, *,
                          seq_len, hidden, num_heads, head_dim,
                          t_tile, e_tile):
    """Fused GRU encoder + intra-metapath edge-softmax aggregation for one
    destination tile of one metapath.

    x:     (L, e_tile, D) bf16   time-major gathered metapath node features
    wih:   (D, 3H) bf16, whh: (H, 3H) bf16, biases: (1, 3H) f32
    wattn: (H, heads) bf16       block-diagonal per-head attention vectors
    dst:   (1, e_tile) int32     local dst index in [0, t_tile) or -1 (pad)
    o:     (t_tile, H) bf16      aggregated per-destination features
    """
    H = hidden
    wih = wih_ref[...]
    whh = whh_ref[...]
    bih = bih_ref[...]            # (1, 3H): implicit broadcast in the adds
    bhh = bhh_ref[...]            # (1, 3H)

    # ---- GRU recurrence (PyTorch GRU gate order r, z, n; h0 = 0).  The
    #      input projection is computed per timestep so no L x rows x 3H f32
    #      temp is ever materialised (v7x VMEM friendly). ------------------
    h = jnp.zeros((e_tile, H), jnp.float32)
    for l in range(seq_len):                       # static: metapath length
        gi = jnp.dot(x_ref[l], wih, preferred_element_type=jnp.float32) + bih
        gh = jnp.dot(h.astype(jnp.bfloat16), whh,
                     preferred_element_type=jnp.float32) + bhh
        r = jax.nn.sigmoid(gi[:, 0:H] + gh[:, 0:H])
        z = jax.nn.sigmoid(gi[:, H:2 * H] + gh[:, H:2 * H])
        n = jnp.tanh(gi[:, 2 * H:] + r * gh[:, 2 * H:])
        h = (1.0 - z) * n + z * h
    eft = h.astype(jnp.bfloat16)                   # (e_tile, H)

    # ---- all-head edge scores in one MXU push, then LeakyReLU(0.01) ------
    s = jnp.dot(eft, wattn_ref[...], preferred_element_type=jnp.float32)
    s = jnp.where(s > 0, s, 0.01 * s)              # (e_tile, heads)
    s_rows = s.T                                   # (heads, e_tile), tiny XLU op

    rows = jax.lax.broadcasted_iota(jnp.int32, (t_tile, e_tile), 0)
    adj = rows == dst_ref[...]                     # (t_tile, e_tile)
    adjf = adj.astype(jnp.float32)
    neg = jnp.float32(-1e30)

    # masked per-destination softmax for each head (heads is small, static)
    ps, invs = [], []
    for hh in range(num_heads):
        logits = jnp.where(adj, s_rows[hh:hh + 1, :], neg)
        m = jnp.max(logits, axis=1, keepdims=True)
        p = jnp.exp(logits - m) * adjf
        denom = jnp.sum(p, axis=1, keepdims=True)
        invs.append(pl.reciprocal(jnp.maximum(denom, 1e-20), approx=True))
        ps.append(p)

    # one stacked (heads*t_tile, e_tile) @ (e_tile, H) MXU matmul replaces
    # the per-head N=head_dim matmuls
    p_all = jnp.concatenate(ps, axis=0).astype(jnp.bfloat16)
    agg = jnp.dot(p_all, eft, preferred_element_type=jnp.float32)
    out = jnp.concatenate(
        [agg[hh * t_tile:(hh + 1) * t_tile,
             hh * head_dim:(hh + 1) * head_dim] * invs[hh]
         for hh in range(num_heads)], axis=1)      # lane-dense (t_tile, H)
    o_ref[...] = out.astype(o_ref.dtype)


def _fuse_kernel(x_ref, mask_ref, w1t_ref, b1_ref, w2row_ref, o_ref, *,
                 num_mp, rows, inv_count):
    # x: (P*rows, H) bf16 raw per-metapath aggregates (pre-ELU)
    # mask: (P*rows, 1) f32; w1t: (H, A) bf16; b1: (1, A) f32; w2row: (1, A)
    # o: (rows, H) f32
    x = x_ref[...].astype(jnp.float32)
    # ELU with overflow-safe dead branch (exp of min(x,0) only)
    elu = jnp.where(x > 0, x, jnp.exp(jnp.minimum(x, 0.0)) - 1.0)
    # batched fc1 over all metapaths at once
    fc1 = jnp.tanh(jnp.dot(elu.astype(jnp.bfloat16), w1t_ref[...],
                           preferred_element_type=jnp.float32) + b1_ref[...])
    fc1 = fc1 * mask_ref[...]                               # zero padded rows
    A = fc1.shape[1]
    means = fc1.reshape(num_mp, rows, A).sum(axis=1) * inv_count      # (P, A)
    # fc2 score as a VPU reduction (bias-free in MAGNN)
    scores = jnp.sum(means * w2row_ref[...], axis=1, keepdims=True)   # (P, 1)
    scores = scores - jnp.max(scores, axis=0, keepdims=True)
    e = jnp.exp(scores)
    beta = e * pl.reciprocal(jnp.sum(e, axis=0, keepdims=True), approx=True)
    Hh = x.shape[1]
    o_ref[...] = jnp.sum(elu.reshape(num_mp, rows, Hh) *
                         beta.reshape(num_mp, 1, 1), axis=0)


# ------------------------------ model (glue) ------------------------------

def ctr_ntype_forward(ctr_p, features_bf16, prep_nt, num_heads, head_dim):
    """MAGNN_ctr_ntype_specific forward (use_minibatch=True, rnn_type='gru')."""
    P, D, _ = ctr_p["gru_wih_t"].shape
    H = num_heads * head_dim
    L = prep_nt["L"]
    e_tile = prep_nt["e_tile"]
    num_tiles = prep_nt["num_tiles"]

    # bf16 gather of metapath-instance node features (time-major, no device
    # transpose needed afterwards)
    xgat = features_bf16[prep_nt["edge_idx"]]             # (P, L, E_all, D)

    # fused GRU + destination-tiled edge softmax / aggregation
    T_pad = num_tiles * T_TILE
    agg = pl.pallas_call(
        partial(_metapath_tile_kernel, seq_len=L, hidden=H,
                num_heads=num_heads, head_dim=head_dim,
                t_tile=T_TILE, e_tile=e_tile),
        grid=(P, num_tiles),
        in_specs=[
            pl.BlockSpec((None, L, e_tile, D), lambda p, t: (p, 0, t, 0)),
            pl.BlockSpec((None, D, 3 * H), lambda p, t: (p, 0, 0)),
            pl.BlockSpec((None, H, 3 * H), lambda p, t: (p, 0, 0)),
            pl.BlockSpec((None, 1, 3 * H), lambda p, t: (p, 0, 0)),
            pl.BlockSpec((None, 1, 3 * H), lambda p, t: (p, 0, 0)),
            pl.BlockSpec((None, H, num_heads), lambda p, t: (p, 0, 0)),
            pl.BlockSpec((None, 1, e_tile),
                         lambda p, t: (p * num_tiles + t, 0, 0)),
        ],
        out_specs=pl.BlockSpec((None, T_TILE, H), lambda p, t: (p, t, 0)),
        out_shape=jax.ShapeDtypeStruct((P, T_pad, H), jnp.bfloat16),
        compiler_params=pltpu.CompilerParams(
            dimension_semantics=("parallel", "parallel")),
    )(xgat, ctr_p["gru_wih_t"], ctr_p["gru_whh_t"],
      ctr_p["gru_bih"], ctr_p["gru_bhh"], ctr_p["wattn"],
      prep_nt["local_dst"])

    # minibatch target selection + inter-metapath attention fusion
    target_idx = prep_nt["target_idx"]
    T_sel = int(target_idx.shape[0])
    ret = agg[:, target_idx, :]                            # (P, T_sel, H) bf16
    T_f = round_up(T_sel, 8)
    ret = jnp.pad(ret, ((0, 0), (0, T_f - T_sel), (0, 0)))
    mask = (jnp.arange(T_f, dtype=jnp.int32) < T_sel).astype(jnp.float32)
    mask = jnp.tile(mask, (P,)).reshape(P * T_f, 1)
    outs2d = ret.reshape(P * T_f, H)

    h = pl.pallas_call(
        partial(_fuse_kernel, num_mp=P, rows=T_f, inv_count=1.0 / T_sel),
        out_shape=jax.ShapeDtypeStruct((T_f, H), jnp.float32),
        in_specs=[VMEM_SPEC] * 5,
        out_specs=VMEM_SPEC,
    )(outs2d, mask, ctr_p["fc1_w_t"], ctr_p["fc1_b"], ctr_p["fc2_row"])
    return h[:T_sel]


def magnn_lp_forward(params, features_list, prep):
    N = prep["N"]
    hidden = params["hidden_dim"]
    transformed = jnp.zeros((N, hidden), jnp.float32)
    for i, fcp in enumerate(params["fc_list"]):
        transformed = transformed.at[prep["type_indices"][i]].set(
            linear(features_list[i], fcp["w_t"], fcp["b"]))
    # feat_drop: identity (eval mode); cast once so the gather moves bf16
    transformed_bf16 = transformed.astype(jnp.bfloat16)
    logits_list, h_list = [], []
    for nt in range(3):
        h = ctr_ntype_forward(params["ctr"][nt], transformed_bf16,
                              prep["ntypes"][nt], params["num_heads"], hidden)
        fo = params["fc_out"][nt]
        logits_list.append(linear(h, fo["w_t"], fo["b"]))
        h_list.append(h)
    return logits_list, h_list


# ---------------------- host-side graph preprocessing ----------------------

def preprocess(type_mask, node_counts, edge_indices_lists, edge_dst_lists,
               target_idx_lists, t_tile=T_TILE, e_tile_align=E_TILE_ALIGN):
    """Sort metapath instances by destination into fixed-size destination
    tiles (replaces the DGL graph / dense one-hot adjacency).  edge_idx is
    stored time-major (P, L, E_all) so no device transpose is needed."""
    prep = {"N": int(type_mask.shape[0])}
    prep["type_indices"] = [
        jnp.asarray(np.where(type_mask == i)[0].astype(np.int32))
        for i in range(len(node_counts))]
    ntypes = []
    for nt in range(3):
        T = int(node_counts[nt])
        num_tiles = -(-T // t_tile)
        ind_list = edge_indices_lists[nt]
        dst_list = edge_dst_lists[nt]
        P = len(ind_list)
        L = int(np.asarray(ind_list[0]).shape[1])
        buckets, max_cnt = [], 1
        for p in range(P):
            dst = np.asarray(dst_list[p])
            b = [np.where((dst >= t * t_tile) & (dst < (t + 1) * t_tile))[0]
                 for t in range(num_tiles)]
            buckets.append(b)
            max_cnt = max(max_cnt, max(len(x) for x in b))
        e_tile = round_up(max_cnt, e_tile_align)
        E_all = num_tiles * e_tile
        edge_idx = np.zeros((P, L, E_all), np.int32)         # time-major
        local_dst = np.full((P * num_tiles, 1, e_tile), -1, np.int32)
        for p in range(P):
            ind = np.asarray(ind_list[p]).astype(np.int32)   # (E, L)
            dst = np.asarray(dst_list[p]).astype(np.int32)
            for t in range(num_tiles):
                sel = buckets[p][t]
                n = len(sel)
                edge_idx[p, :, t * e_tile:t * e_tile + n] = ind[sel].T
                local_dst[p * num_tiles + t, 0, :n] = dst[sel] - t * t_tile
        ntypes.append({
            "edge_idx": jnp.asarray(edge_idx),
            "local_dst": jnp.asarray(local_dst),
            "target_idx": jnp.asarray(np.asarray(target_idx_lists[nt]),
                                      dtype=jnp.int32),
            "num_tiles": num_tiles, "e_tile": e_tile, "L": L,
        })
    prep["ntypes"] = ntypes
    return prep


# --------------------------- parameter init --------------------------------

def xavier_normal(key, shape, gain=1.414):
    fan_out, fan_in = shape[0], shape[-1]
    std = gain * np.sqrt(2.0 / (fan_in + fan_out))
    return std * jax.random.normal(key, shape, dtype=jnp.float32)


def init_params(key, feats_dim_list, hidden_dim, out_dim, num_heads,
                attn_vec_dim, num_metapaths_list):
    keys = iter(jax.random.split(key, 512))
    D = hidden_dim
    H = num_heads * hidden_dim
    params = {"hidden_dim": hidden_dim, "num_heads": num_heads}
    params["fc_list"] = [
        {"w_t": xavier_normal(next(keys), (hidden_dim, fd)).T.astype(jnp.bfloat16),
         "b": 0.01 * jax.random.normal(next(keys), (1, hidden_dim), dtype=jnp.float32)}
        for fd in feats_dim_list]
    # block-diagonal placement mask for per-head attention vectors: (H, heads)
    head_mask = jnp.kron(jnp.eye(num_heads, dtype=jnp.float32),
                         jnp.ones((D, 1), jnp.float32))
    params["ctr"] = []
    params["fc_out"] = []
    for nt in range(3):
        P = num_metapaths_list[nt]
        k = 1.0 / np.sqrt(H)
        wih, whh, bih, bhh, wattn = [], [], [], [], []
        for _ in range(P):
            wih.append(jax.random.uniform(next(keys), (3 * H, D), jnp.float32, -k, k).T)
            whh.append(jax.random.uniform(next(keys), (3 * H, H), jnp.float32, -k, k).T)
            bih.append(jax.random.uniform(next(keys), (1, 3 * H), jnp.float32, -k, k))
            bhh.append(jax.random.uniform(next(keys), (1, 3 * H), jnp.float32, -k, k))
            attn = xavier_normal(next(keys), (num_heads, D))      # (heads, D)
            wattn.append(head_mask * attn.reshape(H, 1))          # (H, heads)
        params["ctr"].append({
            "gru_wih_t": jnp.stack(wih).astype(jnp.bfloat16),     # (P, D, 3H)
            "gru_whh_t": jnp.stack(whh).astype(jnp.bfloat16),     # (P, H, 3H)
            "gru_bih": jnp.stack(bih),                            # (P, 1, 3H)
            "gru_bhh": jnp.stack(bhh),                            # (P, 1, 3H)
            "wattn": jnp.stack(wattn).astype(jnp.bfloat16),       # (P, H, heads)
            "fc1_w_t": xavier_normal(next(keys), (attn_vec_dim, H)).T.astype(jnp.bfloat16),
            "fc1_b": 0.01 * jax.random.normal(next(keys), (1, attn_vec_dim),
                                              dtype=jnp.float32),
            "fc2_row": xavier_normal(next(keys), (1, attn_vec_dim)),  # bias-free fc2
        })
        params["fc_out"].append({
            "w_t": xavier_normal(next(keys), (out_dim, H)).T.astype(jnp.bfloat16),
            "b": 0.01 * jax.random.normal(next(keys), (1, out_dim), dtype=jnp.float32)})
    return params


# ---------------------------------- main ------------------------------------

if __name__ == "__main__":
    # Small, deterministic configuration (lane-dense: heads*hidden = 128).
    feats_dim_list = [6, 5, 7]        # microbe / disease / metabolite raw dims
    node_counts = [4, 3, 5]           # nodes per type; total N = 12
    hidden_dim = 64
    out_dim = 16
    num_heads = 2
    attn_vec_dim = 32
    num_metapaths_list = [2, 2, 2]
    E, L = 8, 3                       # metapath instances per metapath, length

    key = jax.random.PRNGKey(0)
    key, pkey = jax.random.split(key)
    params = init_params(pkey, feats_dim_list, hidden_dim, out_dim, num_heads,
                         attn_vec_dim, num_metapaths_list)

    N = sum(node_counts)
    type_mask = np.concatenate([np.full(c, i, dtype=np.int32)
                                for i, c in enumerate(node_counts)])
    offsets = np.cumsum([0] + node_counts[:-1])

    data_keys = iter(jax.random.split(key, 128))
    features_list = [jax.random.normal(next(data_keys), (c, d), jnp.float32)
                     for c, d in zip(node_counts, feats_dim_list)]

    edge_indices_lists, edge_dst_lists, target_idx_lists = [], [], []
    for nt in range(3):
        T = node_counts[nt]
        ind_list, dst_list = [], []
        for _ in range(num_metapaths_list[nt]):
            # every target gets at least one incoming metapath instance
            dst = jnp.concatenate([
                jnp.arange(T, dtype=jnp.int32),
                jax.random.randint(next(data_keys), (E - T,), 0, T, jnp.int32)])
            idx = jax.random.randint(next(data_keys), (E, L), 0, N, jnp.int32)
            idx = idx.at[:, L - 1].set(int(offsets[nt]) + dst)  # last = target
            ind_list.append(idx)
            dst_list.append(dst)
        edge_indices_lists.append(ind_list)
        edge_dst_lists.append(dst_list)
        target_idx_lists.append(jnp.arange(T, dtype=jnp.int32))

    prep = preprocess(type_mask, node_counts, edge_indices_lists,
                      edge_dst_lists, target_idx_lists)

    logits_list, h_list = magnn_lp_forward(params, features_list, prep)

    for x in logits_list + h_list:
        jax.block_until_ready(x)

    assert logits_list[0].shape == (node_counts[0], out_dim)
    assert logits_list[1].shape == (node_counts[1], out_dim)
    assert logits_list[2].shape == (node_counts[2], out_dim)
    assert h_list[0].shape == (node_counts[0], num_heads * hidden_dim)
    assert all(bool(jnp.all(jnp.isfinite(x))) for x in logits_list + h_list)
    print("KERNEL_OK")
</pallas_src>

<mosaic_0001>
module attributes {stable_mosaic.version = 11 : i64} {
  func.func @_linear_kernel(%arg0: memref<4x6xbf16, #tpu.memory_space<vmem>>, %arg1: memref<6x64xbf16, #tpu.memory_space<vmem>>, %arg2: memref<1x64xf32, #tpu.memory_space<vmem>>, %arg3: memref<4x64xf32, #tpu.memory_space<vmem>>) attributes {dimension_semantics = [], scalar_prefetch = 0 : i64, scratch_operands = 0 : i64, tpu.core_type = #tpu.core_type<tc>} {
    %c0 = arith.constant 0 : index
    %c0_0 = arith.constant 0 : index
    %0 = vector.load %arg0[%c0, %c0_0] : memref<4x6xbf16, #tpu.memory_space<vmem>>, vector<4x6xbf16>
    %c0_1 = arith.constant 0 : index
    %c0_2 = arith.constant 0 : index
    %1 = vector.load %arg1[%c0_1, %c0_2] : memref<6x64xbf16, #tpu.memory_space<vmem>>, vector<6x64xbf16>
    %cst = arith.constant dense<0.000000e+00> : vector<4x64xf32>
    %2 = tpu.matmul %0, %1, %cst {dimension_numbers = #tpu.dot_dimension_numbers<[1], [0], [0], [1], [0, 0, 1, 1], [], []>} : vector<4x6xbf16>, vector<6x64xbf16>, vector<4x64xf32> -> vector<4x64xf32>
    %c0_3 = arith.constant 0 : index
    %c0_4 = arith.constant 0 : index
    %3 = vector.load %arg2[%c0_3, %c0_4] : memref<1x64xf32, #tpu.memory_space<vmem>>, vector<1x64xf32>
    %4 = vector.broadcast %3 : vector<1x64xf32> to vector<4x64xf32>
    %5 = arith.addf %2, %4 : vector<4x64xf32>
    %c0_5 = arith.constant 0 : index
    %c0_6 = arith.constant 0 : index
    %6 = vector.load %arg3[%c0_5, %c0_6] : memref<4x64xf32, #tpu.memory_space<vmem>>, vector<4x64xf32>
    tpu.vector_store %arg3[%c0_5, %c0_6], %5 {strides = array<i32>} : memref<4x64xf32, #tpu.memory_space<vmem>>, vector<4x64xf32>,
    return
  }
}

</mosaic_0001>

<bundles_post_ra>
// kernel: tpu_custom_call.1
= control target key start
LH: loop header
LB: loop body
LE: loop exit
PB: predicated region body
PF: predicated region fallthrough
CT: control target
= control target key end

     0   :  { %8 = vsyncpa [#allocation3], 0  ;;  %s233_s0 = inlined_call_operand.hbm [shape: bf16[4,6], index: 0, kind: input, shape index: {}]   ;;  %s234_s1 = inlined_call_operand.hbm [shape: bf16[6,64], index: 1, kind: input, shape index: {}]   ;;  %s235_s2 = inlined_call_operand.vmem [shape: f32[1,64], index: 2, kind: input, shape index: {}]   ;;  %s236_s3 = inlined_call_operand.hbm [shape: f32[4,64], index: 3, kind: output, shape index: {}]  }
   0x1   :  { %9 = vsyncpa [#allocation6], 0 }
   0x2   :  { %10 = vsyncpa [#allocation4], 0  ;;  %s196_s12 = smov [#allocation2]   ;;  %s197_s14 = smov [#allocation5]  }
   0x3   :  { %s17_s13 = sshll.u32 %s196_s12, 4  ;;  %s27_s15 = sshll.u32 %s197_s14, 4  ;;  %s18_s13 = int_to_ptr.vmem [resolvable:$true] %s17_s13  ;;  %s28_s15 = int_to_ptr.vmem [resolvable:$true] %s27_s15 }
   0x4   :  { %s138_s16 = scalar_lea.vmem %s18_s13, 32  ;;  %p143_p1 = scmp.lt.s32.totalorder %s18_s13, %s18_s13 }
   0x5   :  { %p139_p0 = scmp.ne.s32.totalorder %s18_s13, %s138_s16  ;;  %p144_p2 = scmp.lt.s32.totalorder %s138_s16, %s138_s16 }
   0x7   :  { %p145_p3 = por %p144_p2, %p143_p1 }
   0x9   :  { %p146_p4 = pnand %p145_p3, %p139_p0 }
   0xb   :  { %149 = shalt.err (!%p146_p4)
}
   0xc   :  { %20 = dma.hbm_to_vmem [thread:$0]  %s233_s0, 32, %s18_s13, [#allocation3]  }
   0xd   :  { %s158_s19 = scalar_lea.vmem %s28_s15, 64  ;;  %p163_p6 = scmp.lt.s32.totalorder %s28_s15, %s28_s15 }
   0xe   :  { %p159_p5 = scmp.ne.s32.totalorder %s28_s15, %s158_s19  ;;  %p164_p7 = scmp.lt.s32.totalorder %s158_s19, %s158_s19 }
  0x10   :  { %p165_p8 = por %p164_p7, %p163_p6 }
  0x12   :  { %p166_p9 = pnand %p165_p8, %p159_p5 }
  0x14   :  { %169 = shalt.err (!%p166_p9)
}
  0x15   :  { %30 = dma.hbm_to_vmem [thread:$0]  %s234_s1, 64, %s28_s15, [#allocation6]  }
  0x16   :  { %190 = dma.done.wait [#allocation3], 32  }
  0x17   :  { %191 = vsyncadd [#allocation3], 4294967264 }
  0x18   :  { %192 = dma.done.wait [#allocation6], 64  }
  0x19   :  { %193 = vsyncadd [#allocation6], 4294967232  ;;  %v198_v0 = vmov 0.0   ;;  %vm199_vm0 = vmmov 0   ;;  %vm53_vm1 = vcmask 1042432   ;;  %vm49_vm2 = vcmask 48128  }
  0x1a   :  { %119 = vmatprep.subr.bf16.mxu0 %v198_v0  ;;  %121 = vmatprep.mubr.msk.bf16.mxu0 %vm199_vm0, %v198_v0  ;;  %v41_v1 = vld [vmem:[#allocation5] sm:$0x7]  ;;  %v40_v3 = vld [vmem:[#allocation2] sm:$0x3]  ;;  %s200_s1 = smov [#allocation7]   ;;  %vm97_vm3 = vcmask 519168  }
  0x1b   :  { %v55_v2 = vsel %vm53_vm1, %v41_v1, 0  ;;  %v115_v4 = vld [vmem:[%s235_s2] ss:$0 sm:$0xff]  ;;  %s105_s23 = sshll.u32 %s200_s1, 4  ;;  %s106_s23 = int_to_ptr.vmem [resolvable:$true] %s105_s23 }
  0x1c   :  { %120 = vmatpush3.bf16.msra.mxu0 %v55_v2  ;;  %s170_s24 = scalar_lea.vmem %s106_s23, 64  ;;  %p175_p11 = scmp.lt.s32.totalorder %s106_s23, %s106_s23 }
  0x1d   :  { %p171_p10 = scmp.ne.s32.totalorder %s106_s23, %s170_s24  ;;  %p176_p12 = scmp.lt.s32.totalorder %s170_s24, %s170_s24 }
  0x1f   :  { %122 = vmatmul.mubr.msk.bf16.vlgmr.msra.gmra.mxu0 %vm49_vm2, %v40_v3  ;;  %p177_p13 = por %p176_p12, %p175_p11 }
  0x21   :  { %p178_p0 = pnand %p177_p13, %p171_p10 }
  0xdf   :  { %v91_v5 = vpop.f32.mrf.mxu0 }
  0xe0   :  { %v92_v6 = vadd.f32 %v115_v4, %v91_v5 }
  0xe1   :  { %v123_v7 = vpop.f32.mrf.mxu0 }
  0xe2   :  { %98 = vst.msk [vmem:[#allocation7] sm:$0xf] %vm97_vm3, %v92_v6 }
  0xe3   :  { %v94_v8 = vpop.f32.mrf.mxu0 }
  0xe4   :  { %181 = shalt.err (!%p178_p0)
}
  0xe5   :  { %108 = dma.vmem_to_hbm [thread:$0]  %s106_s23, 64, %s236_s3, [#allocation4]   ;;  %v124_v9 = vpop.f32.mrf.mxu0 }
  0xe6   :  { %194 = dma.done.wait [#allocation4], 64  }
  0xe7   :  { %195 = vsyncadd [#allocation4], 4294967232 }
  0xe8   :  { %112 = vsyncpa [#allocation3], 1 }
  0xe9   :  { %113 = vsyncpa [#allocation6], 1 }
  0xea   :  { %114 = vsyncpa [#allocation4], 1 }

</bundles_post_ra>
